<compile_context>
chip_gen: v5e
topology: v5e:2x2
jax: 0.10.0
libtpu: 0.0.40
codegen_flags: <defaults>
</compile_context>

<pallas_src>
import functools

import jax
import jax.numpy as jnp
from jax import lax
from jax.experimental import pallas as pl
from jax.experimental.pallas import tpu as pltpu


# ----------------------------------------------------------------------------
# Pallas kernel: fused im2col + conv + bias + ReLU, lane-dense NCHW output
# ----------------------------------------------------------------------------
def _conv_relu_kernel(x_ref, w_ref, b_ref, o_ref, *, kh, kw, W, stride):
    # x_ref: (Cin, H*W)         flattened input, one batch element
    # w_ref: (kh*kw, Cout, Cin) weights, tap-major (each [t] is its own tile)
    # b_ref: (Cout, 1)
    # o_ref: (Cout, M)          wide conv output, M = (Ho-1)*W + Wo
    #
    # Wide-output trick: for wide index m = ho*W + w, tap (i, j) reads flat
    # input index stride*m + i*W + j.  Each tap's contribution over all m is
    # one contiguous (strided) lane slice, and the whole tap is a single
    # (Cout, Cin) @ (Cin, M) contraction.  Columns w >= Wo are garbage and are
    # sliced off in the wrapper.  With M = (Ho-1)*W + Wo the largest read is
    # exactly H*W - 1, so no input padding is needed.
    cout, m = o_ref.shape
    x = x_ref[...]                                          # (Cin, H*W)
    # Bias folded into the accumulator init (lane broadcast, hoisted once).
    acc = jnp.broadcast_to(b_ref[...], (cout, m)).astype(jnp.float32)
    for i in range(kh):
        for j in range(kw):
            start = i * W + j
            stop = start + (m - 1) * stride + 1
            xs = x[:, start:stop:stride]                    # (Cin, M) lane slice
            wij = w_ref[i * kw + j]                         # (Cout, Cin)
            # Tiny contraction (K = Cin): this op is HBM/launch bound at these
            # channel counts; the dot keeps the lane dim wide (M >= 128) and
            # scales to larger Cin/Cout on the MXU.
            acc = acc + jnp.dot(wij, xs, preferred_element_type=jnp.float32)
    o_ref[...] = jnp.maximum(acc, 0.0).astype(o_ref.dtype)


# ----------------------------------------------------------------------------
# Wrapper: layout plumbing (all free/cheap), pallas_call, nearest upsample
# ----------------------------------------------------------------------------
def conv_unsampling_forward(x_nchw, weight, bias, stride, scale_factor):
    """Equivalent of _Conv_Unsampling.forward.

    x_nchw : (N, Cin, H, W)      float32
    weight : (Cout, Cin, kh, kw) float32   (PyTorch Conv2d layout, padding=0)
    bias   : (Cout,)             float32
    returns: (N, Cout, Ho*scale, Wo*scale) float32
    """
    Cout, Cin, kh, kw = weight.shape
    N, Cin2, H, W = x_nchw.shape
    assert Cin2 == Cin
    stride = int(stride)
    sf = int(scale_factor)
    assert sf == scale_factor and sf >= 1, "only integer scale_factor (nearest)"

    Ho = (H - kh) // stride + 1          # VALID conv (Conv2d default padding=0)
    Wo = (W - kw) // stride + 1

    # Exact wide width: last valid output (Ho-1, Wo-1) reads flat index H*W-1
    # with the last tap, so all tap slices stay in-bounds -> no input padding.
    M = (Ho - 1) * W + Wo

    x_flat = x_nchw.reshape(N, Cin, H * W)   # free: contiguous dim collapse

    # weight (Cout, Cin, kh, kw) -> (kh*kw, Cout, Cin); tiny, done once by XLA.
    w_k = jnp.transpose(weight, (2, 3, 0, 1)).reshape(kh * kw, Cout, Cin)
    b_mat = bias.reshape(Cout, 1).astype(jnp.float32)

    kernel = functools.partial(_conv_relu_kernel, kh=kh, kw=kw, W=W, stride=stride)

    flops = 2 * N * Ho * Wo * Cout * Cin * kh * kw
    bytes_accessed = (x_flat.size + w_k.size + b_mat.size + N * Cout * M) * 4

    y_wide = pl.pallas_call(
        kernel,
        out_shape=jax.ShapeDtypeStruct((N, Cout, M), jnp.float32),
        grid=(N,),
        in_specs=[
            pl.BlockSpec((None, Cin, H * W), lambda n: (n, 0, 0)),       # per-batch
            pl.BlockSpec((kh * kw, Cout, Cin), lambda n: (0, 0, 0)),     # resident
            pl.BlockSpec((Cout, 1), lambda n: (0, 0)),                   # resident
        ],
        out_specs=pl.BlockSpec((None, Cout, M), lambda n: (n, 0, 0)),
        compiler_params=pltpu.CompilerParams(
            dimension_semantics=("parallel",)),
        cost_estimate=pl.CostEstimate(
            flops=flops, transcendentals=0, bytes_accessed=bytes_accessed),
    )(x_flat, w_k, b_mat)

    # Unpack wide layout: pad tail to Ho*W, reshape, drop garbage columns.
    # Already NCHW-ordered; XLA fuses this with the upsample broadcast below.
    pad = Ho * W - M
    y = jnp.pad(y_wide, ((0, 0), (0, 0), (0, pad))) if pad > 0 else y_wide
    y = y.reshape(N, Cout, Ho, W)[:, :, :, :Wo]

    # Nearest-neighbor upsample: single broadcast + reshape (one HBM pass).
    # TODO(synk): could be fused into the kernel store path via a replicated
    # output layout, but that needs in-kernel minor-dim reshapes / narrow
    # masked stores; left to XLA since it is pure data replication.
    y = jnp.broadcast_to(y[:, :, :, None, :, None], (N, Cout, Ho, sf, Wo, sf))
    return y.reshape(N, Cout, Ho * sf, Wo * sf)


# ----------------------------------------------------------------------------
# Main
# ----------------------------------------------------------------------------
if __name__ == "__main__":
    # Module hyper-params (synthetic, deterministic)
    input_features, output_features = 4, 8
    kernel_size, stride, scale_factor = 3, 1, 2

    key = jax.random.PRNGKey(0)
    kx, kwt, kb = jax.random.split(key, 3)

    x = jax.random.normal(kx, (2, input_features, 16, 16), dtype=jnp.float32)
    weight = 0.1 * jax.random.normal(
        kwt, (output_features, input_features, kernel_size, kernel_size),
        dtype=jnp.float32)
    bias = 0.1 * jax.random.normal(kb, (output_features,), dtype=jnp.float32)

    fwd = jax.jit(functools.partial(
        conv_unsampling_forward, stride=stride, scale_factor=scale_factor))
    out = jax.block_until_ready(fwd(x, weight, bias))

    # Reference check with stock XLA conv (same semantics as PyTorch Conv2d).
    ref = lax.conv_general_dilated(
        x, weight, window_strides=(stride, stride), padding="VALID",
        dimension_numbers=("NCHW", "OIHW", "NCHW"))
    ref = jnp.maximum(ref + bias[None, :, None, None], 0.0)
    ref = jnp.repeat(jnp.repeat(ref, scale_factor, axis=2), scale_factor, axis=3)

    assert out.shape == ref.shape, (out.shape, ref.shape)
    assert jnp.allclose(out, ref, atol=1e-4, rtol=1e-4), float(
        jnp.max(jnp.abs(out - ref)))

    print("KERNEL_OK")
</pallas_src>

<mosaic_0001>
module attributes {stable_mosaic.version = 11 : i64} {
  func.func @_conv_relu_kernel(%arg0: i32, %arg1: memref<1x4x256xf32, #tpu.memory_space<vmem>>, %arg2: memref<9x8x4xf32, #tpu.memory_space<vmem>>, %arg3: memref<8x1xf32, #tpu.memory_space<vmem>>, %arg4: memref<1x8x222xf32, #tpu.memory_space<vmem>>) attributes {dimension_semantics = [#tpu.dimension_semantics<parallel>], iteration_bounds = array<i64: 2>, scalar_prefetch = 0 : i64, scratch_operands = 0 : i64, tpu.core_type = #tpu.core_type<tc>, window_params = [{transform_indices = @transform_0, window_bounds = array<i64: 1, 4, 256>}, {pipeline_mode = #tpu.pipeline_mode<synchronous>, transform_indices = @transform_1, window_bounds = array<i64: 9, 8, 4>}, {pipeline_mode = #tpu.pipeline_mode<synchronous>, transform_indices = @transform_2, window_bounds = array<i64: 8, 1>}, {transform_indices = @transform_3, window_bounds = array<i64: 1, 8, 222>}]} {
    %c0 = arith.constant 0 : index
    %c0_0 = arith.constant 0 : index
    %c0_1 = arith.constant 0 : index
    %0 = vector.load %arg1[%c0, %c0_0, %c0_1] : memref<1x4x256xf32, #tpu.memory_space<vmem>>, vector<1x4x256xf32>
    %1 = vector.shape_cast %0 : vector<1x4x256xf32> to vector<4x256xf32>
    %c0_2 = arith.constant 0 : index
    %c0_3 = arith.constant 0 : index
    %2 = vector.load %arg3[%c0_2, %c0_3] : memref<8x1xf32, #tpu.memory_space<vmem>>, vector<8x1xf32>
    %3 = vector.shape_cast %2 : vector<8x1xf32> to vector<8x1xf32>
    %4 = vector.broadcast %3 : vector<8x1xf32> to vector<8x222xf32>
    %5 = vector.extract_strided_slice %1 {offsets = [0, 0], sizes = [4, 222], strides = [1, 1]} : vector<4x256xf32> to vector<4x222xf32>
    %c0_4 = arith.constant 0 : index
    %c0_5 = arith.constant 0 : index
    %c0_6 = arith.constant 0 : index
    %6 = vector.load %arg2[%c0_4, %c0_5, %c0_6] : memref<9x8x4xf32, #tpu.memory_space<vmem>>, vector<1x8x4xf32>
    %7 = vector.shape_cast %6 : vector<1x8x4xf32> to vector<8x4xf32>
    %cst = arith.constant dense<0.000000e+00> : vector<8x222xf32>
    %8 = tpu.matmul %7, %5, %cst {dimension_numbers = #tpu.dot_dimension_numbers<[1], [0], [0], [1], [0, 0, 1, 1], [], []>} : vector<8x4xf32>, vector<4x222xf32>, vector<8x222xf32> -> vector<8x222xf32>
    %9 = arith.addf %4, %8 : vector<8x222xf32>
    %10 = vector.extract_strided_slice %1 {offsets = [0, 1], sizes = [4, 222], strides = [1, 1]} : vector<4x256xf32> to vector<4x222xf32>
    %c1 = arith.constant 1 : index
    %c0_7 = arith.constant 0 : index
    %c0_8 = arith.constant 0 : index
    %11 = vector.load %arg2[%c1, %c0_7, %c0_8] : memref<9x8x4xf32, #tpu.memory_space<vmem>>, vector<1x8x4xf32>
    %12 = vector.shape_cast %11 : vector<1x8x4xf32> to vector<8x4xf32>
    %cst_9 = arith.constant dense<0.000000e+00> : vector<8x222xf32>
    %13 = tpu.matmul %12, %10, %cst_9 {dimension_numbers = #tpu.dot_dimension_numbers<[1], [0], [0], [1], [0, 0, 1, 1], [], []>} : vector<8x4xf32>, vector<4x222xf32>, vector<8x222xf32> -> vector<8x222xf32>
    %14 = arith.addf %9, %13 : vector<8x222xf32>
    %15 = vector.extract_strided_slice %1 {offsets = [0, 2], sizes = [4, 222], strides = [1, 1]} : vector<4x256xf32> to vector<4x222xf32>
    %c2 = arith.constant 2 : index
    %c0_10 = arith.constant 0 : index
    %c0_11 = arith.constant 0 : index
    %16 = vector.load %arg2[%c2, %c0_10, %c0_11] : memref<9x8x4xf32, #tpu.memory_space<vmem>>, vector<1x8x4xf32>
    %17 = vector.shape_cast %16 : vector<1x8x4xf32> to vector<8x4xf32>
    %cst_12 = arith.constant dense<0.000000e+00> : vector<8x222xf32>
    %18 = tpu.matmul %17, %15, %cst_12 {dimension_numbers = #tpu.dot_dimension_numbers<[1], [0], [0], [1], [0, 0, 1, 1], [], []>} : vector<8x4xf32>, vector<4x222xf32>, vector<8x222xf32> -> vector<8x222xf32>
    %19 = arith.addf %14, %18 : vector<8x222xf32>
    %20 = vector.extract_strided_slice %1 {offsets = [0, 16], sizes = [4, 222], strides = [1, 1]} : vector<4x256xf32> to vector<4x222xf32>
    %c3 = arith.constant 3 : index
    %c0_13 = arith.constant 0 : index
    %c0_14 = arith.constant 0 : index
    %21 = vector.load %arg2[%c3, %c0_13, %c0_14] : memref<9x8x4xf32, #tpu.memory_space<vmem>>, vector<1x8x4xf32>
    %22 = vector.shape_cast %21 : vector<1x8x4xf32> to vector<8x4xf32>
    %cst_15 = arith.constant dense<0.000000e+00> : vector<8x222xf32>
    %23 = tpu.matmul %22, %20, %cst_15 {dimension_numbers = #tpu.dot_dimension_numbers<[1], [0], [0], [1], [0, 0, 1, 1], [], []>} : vector<8x4xf32>, vector<4x222xf32>, vector<8x222xf32> -> vector<8x222xf32>
    %24 = arith.addf %19, %23 : vector<8x222xf32>
    %25 = vector.extract_strided_slice %1 {offsets = [0, 17], sizes = [4, 222], strides = [1, 1]} : vector<4x256xf32> to vector<4x222xf32>
    %c4 = arith.constant 4 : index
    %c0_16 = arith.constant 0 : index
    %c0_17 = arith.constant 0 : index
    %26 = vector.load %arg2[%c4, %c0_16, %c0_17] : memref<9x8x4xf32, #tpu.memory_space<vmem>>, vector<1x8x4xf32>
    %27 = vector.shape_cast %26 : vector<1x8x4xf32> to vector<8x4xf32>
    %cst_18 = arith.constant dense<0.000000e+00> : vector<8x222xf32>
    %28 = tpu.matmul %27, %25, %cst_18 {dimension_numbers = #tpu.dot_dimension_numbers<[1], [0], [0], [1], [0, 0, 1, 1], [], []>} : vector<8x4xf32>, vector<4x222xf32>, vector<8x222xf32> -> vector<8x222xf32>
    %29 = arith.addf %24, %28 : vector<8x222xf32>
    %30 = vector.extract_strided_slice %1 {offsets = [0, 18], sizes = [4, 222], strides = [1, 1]} : vector<4x256xf32> to vector<4x222xf32>
    %c5 = arith.constant 5 : index
    %c0_19 = arith.constant 0 : index
    %c0_20 = arith.constant 0 : index
    %31 = vector.load %arg2[%c5, %c0_19, %c0_20] : memref<9x8x4xf32, #tpu.memory_space<vmem>>, vector<1x8x4xf32>
    %32 = vector.shape_cast %31 : vector<1x8x4xf32> to vector<8x4xf32>
    %cst_21 = arith.constant dense<0.000000e+00> : vector<8x222xf32>
    %33 = tpu.matmul %32, %30, %cst_21 {dimension_numbers = #tpu.dot_dimension_numbers<[1], [0], [0], [1], [0, 0, 1, 1], [], []>} : vector<8x4xf32>, vector<4x222xf32>, vector<8x222xf32> -> vector<8x222xf32>
    %34 = arith.addf %29, %33 : vector<8x222xf32>
    %35 = vector.extract_strided_slice %1 {offsets = [0, 32], sizes = [4, 222], strides = [1, 1]} : vector<4x256xf32> to vector<4x222xf32>
    %c6 = arith.constant 6 : index
    %c0_22 = arith.constant 0 : index
    %c0_23 = arith.constant 0 : index
    %36 = vector.load %arg2[%c6, %c0_22, %c0_23] : memref<9x8x4xf32, #tpu.memory_space<vmem>>, vector<1x8x4xf32>
    %37 = vector.shape_cast %36 : vector<1x8x4xf32> to vector<8x4xf32>
    %cst_24 = arith.constant dense<0.000000e+00> : vector<8x222xf32>
    %38 = tpu.matmul %37, %35, %cst_24 {dimension_numbers = #tpu.dot_dimension_numbers<[1], [0], [0], [1], [0, 0, 1, 1], [], []>} : vector<8x4xf32>, vector<4x222xf32>, vector<8x222xf32> -> vector<8x222xf32>
    %39 = arith.addf %34, %38 : vector<8x222xf32>
    %40 = vector.extract_strided_slice %1 {offsets = [0, 33], sizes = [4, 222], strides = [1, 1]} : vector<4x256xf32> to vector<4x222xf32>
    %c7 = arith.constant 7 : index
    %c0_25 = arith.constant 0 : index
    %c0_26 = arith.constant 0 : index
    %41 = vector.load %arg2[%c7, %c0_25, %c0_26] : memref<9x8x4xf32, #tpu.memory_space<vmem>>, vector<1x8x4xf32>
    %42 = vector.shape_cast %41 : vector<1x8x4xf32> to vector<8x4xf32>
    %cst_27 = arith.constant dense<0.000000e+00> : vector<8x222xf32>
    %43 = tpu.matmul %42, %40, %cst_27 {dimension_numbers = #tpu.dot_dimension_numbers<[1], [0], [0], [1], [0, 0, 1, 1], [], []>} : vector<8x4xf32>, vector<4x222xf32>, vector<8x222xf32> -> vector<8x222xf32>
    %44 = arith.addf %39, %43 : vector<8x222xf32>
    %45 = vector.extract_strided_slice %1 {offsets = [0, 34], sizes = [4, 222], strides = [1, 1]} : vector<4x256xf32> to vector<4x222xf32>
    %c8 = arith.constant 8 : index
    %c0_28 = arith.constant 0 : index
    %c0_29 = arith.constant 0 : index
    %46 = vector.load %arg2[%c8, %c0_28, %c0_29] : memref<9x8x4xf32, #tpu.memory_space<vmem>>, vector<1x8x4xf32>
    %47 = vector.shape_cast %46 : vector<1x8x4xf32> to vector<8x4xf32>
    %cst_30 = arith.constant dense<0.000000e+00> : vector<8x222xf32>
    %48 = tpu.matmul %47, %45, %cst_30 {dimension_numbers = #tpu.dot_dimension_numbers<[1], [0], [0], [1], [0, 0, 1, 1], [], []>} : vector<8x4xf32>, vector<4x222xf32>, vector<8x222xf32> -> vector<8x222xf32>
    %49 = arith.addf %44, %48 : vector<8x222xf32>
    %cst_31 = arith.constant 0.000000e+00 : f32
    %50 = vector.broadcast %cst_31 : f32 to vector<8x222xf32>
    %51 = arith.maximumf %49, %50 : vector<8x222xf32>
    %c0_32 = arith.constant 0 : index
    %c0_33 = arith.constant 0 : index
    %c0_34 = arith.constant 0 : index
    %52 = vector.load %arg4[%c0_32, %c0_33, %c0_34] : memref<1x8x222xf32, #tpu.memory_space<vmem>>, vector<1x8x222xf32>
    %53 = vector.shape_cast %52 : vector<1x8x222xf32> to vector<8x222xf32>
    %54 = vector.shape_cast %51 : vector<8x222xf32> to vector<1x8x222xf32>
    tpu.vector_store %arg4[%c0_32, %c0_33, %c0_34], %54 {strides = array<i32>} : memref<1x8x222xf32, #tpu.memory_space<vmem>>, vector<1x8x222xf32>,
    return
  }
  func.func @transform_0(%arg0: i32) -> (i32, i32, i32) {
    %c0_i32 = arith.constant 0 : i32
    %c0_i32_0 = arith.constant 0 : i32
    %c0_i32_1 = arith.constant 0 : i32
    return %arg0, %c0_i32, %c0_i32_0 : i32, i32, i32
  }
  func.func @transform_1(%arg0: i32) -> (i32, i32, i32) {
    %c0_i32 = arith.constant 0 : i32
    %c0_i32_0 = arith.constant 0 : i32
    %c0_i32_1 = arith.constant 0 : i32
    %c0_i32_2 = arith.constant 0 : i32
    return %c0_i32, %c0_i32_0, %c0_i32_1 : i32, i32, i32
  }
  func.func @transform_2(%arg0: i32) -> (i32, i32) {
    %c0_i32 = arith.constant 0 : i32
    %c0_i32_0 = arith.constant 0 : i32
    %c0_i32_1 = arith.constant 0 : i32
    return %c0_i32, %c0_i32_0 : i32, i32
  }
  func.func @transform_3(%arg0: i32) -> (i32, i32, i32) {
    %c0_i32 = arith.constant 0 : i32
    %c0_i32_0 = arith.constant 0 : i32
    %c0_i32_1 = arith.constant 0 : i32
    return %arg0, %c0_i32, %c0_i32_0 : i32, i32, i32
  }
}

</mosaic_0001>

<bundles_post_ra>
// kernel: conv_unsampling_forward.1
= control target key start
LH: loop header
LB: loop body
LE: loop exit
PB: predicated region body
PF: predicated region fallthrough
CT: control target
= control target key end

     0   :  { %s886_s12 = smov 0   ;;  %s975_s0 = inlined_call_operand.vmem [shape: f32[2,4,256], index: 0, kind: input, shape index: {}]   ;;  %s976_s1 = inlined_call_operand.vmem [shape: f32[9,8,4], index: 1, kind: input, shape index: {}]   ;;  %s977_s2 = inlined_call_operand.vmem [shape: f32[8,1], index: 2, kind: input, shape index: {}]   ;;  %s978_s3 = inlined_call_operand.vmem [shape: f32[2,8,222], index: 3, kind: output, shape index: {}]  }
   0x1 LB: > { %s773_s13 = sadd.s32 4294967295, %s855_s12   ;;  %p777_p0 = scmp.ge.s32.totalorder %s855_s12, 1  ;;  %s855_s12 = sphi %s886_s12, %s13_s12  }
   0x2   : > { %p137_p1 = scmp.lt.s32.totalorder %s855_s12, 3 }
   0x4   : > { %p138_p2 = pnand %p777_p0, %p137_p1 }
   0x5   : > { %p161_p3 = scmp.lt.s32.totalorder (!%p138_p2), %s773_s13, 1  ;;  %s857_s18 = smov (!%p138_p2), 127  }
   0x6   : > { %141 = sbr.rel (%p138_p2) target bundleno = 335 (0x14f), region = 32  ;;  %s858_s19 = smov (!%p138_p2), 126  }
   0x7   : > { %s859_s20 = smov (!%p138_p2), 112   ;;  %s860_s21 = smov (!%p138_p2), 111  }
   0x8   : > { %s861_s22 = smov (!%p138_p2), 110   ;;  %s862_s23 = smov (!%p138_p2), 96  }
   0x9   : > { %s863_s24 = smov (!%p138_p2), 95   ;;  %s864_s25 = smov (!%p138_p2), 94  }
   0xb   : > { %s980_s13 = smov (!%p161_p3, %s773_s13), 1  ;;  %vm187_vm0 = vcmask 1043456   ;;  %v178_v19 = vld [vmem:[%s976_s1] sm:$0xff]  ;;  %vm183_vm1 = vcmask 31744   ;;  %v865_v23 = vmov 0   ;;  %vm243_vm2 = vcmask 1039360  }
   0xc   : > { %s828_s14 = sshll.u32 %s980_s13, 3  ;;  %847 = vset.pattern.permute.xlu1 %v865_v23  ;;  %v172_v24 = vld [vmem:[%s977_s2] sm:$0xff]  ;;  %848 = vset.pattern.permute.xlu0 %v865_v23  ;;  %vm363_vm3 = vcmask 916480   ;;  %v786_v25 = vld [vmem:[%s976_s1 + $0x8] sm:$0xff]  ;;  %vm303_vm4 = vcmask 1031168   ;;  %v791_v31 = vld [vmem:[%s976_s1 + $0x10] sm:$0xff] }
   0xd   : > { %s165_s17 = scalar_lea.vmem %s975_s0, %s828_s14  ;;  %v796_v33 = vld [vmem:[%s976_s1 + $0x18] sm:$0xff]  ;;  %vm423_vm5 = vcmask 908288   ;;  %v801_v35 = vld [vmem:[%s976_s1 + $0x20] sm:$0xff]  ;;  %vm483_vm6 = vcmask 900096   ;;  %v806_v40 = vld [vmem:[%s976_s1 + $0x28] sm:$0xff]  ;;  %vm543_vm7 = vcmask 785408  }
   0xe   : > { %v171_v0 = vld [vmem:[%s165_s17] sm:$0xff]  ;;  %v811_v42 = vld [vmem:[%s976_s1 + $0x30] sm:$0xff]  ;;  %vm603_vm8 = vcmask 777216   ;;  %v816_v46 = vld [vmem:[%s976_s1 + $0x38] sm:$0xff]  ;;  %vm663_vm9 = vcmask 769024  }
   0xf   : > { %180 = vst [vmem:[#allocation1] ss:$2 sm:$0xff] %v171_v0  ;;  %v821_v51 = vld [vmem:[%s976_s1 + $0x40] sm:$0xff] }
  0x16   : > { %v181_v1 = vld.sshfl [vmem:[#allocation1] sm:$0xff pattern:$0x75316420]  ;;  %v182_v2 = vld.sshfl [vmem:[#allocation1 + $0x8] sm:$0xff pattern:$0x75316420] }
  0x17   : > { %236 = vst [vmem:[#allocation1] ss:$2 sm:$0xff] %v171_v0  ;;  %782 = vmatpush.msk.msra.mxu0 %vm187_vm0, %v181_v1  ;;  %784 = vmatpush.msk.msra.mxu1 %vm187_vm0, %v182_v2 }
  0x18   : > { %783 = vmatmul.msk.f32.vlgmr.msra.gmra.mxu0 %vm183_vm1, %v178_v19  ;;  %785 = vmatmul.msk.f32.vlgmr.msra.gmra.mxu1 %vm183_vm1, %v178_v19 }
  0x1e   : > { %v237_v3 = vld.sshfl [vmem:[#allocation1] sm:$0xff pattern:$0x75316420]  ;;  %v238_v4 = vld.sshfl [vmem:[#allocation1 + $0x8] sm:$0xff pattern:$0x75316420] }
  0x1f   : > { %239 = vrot.lane.b32.xlu0 %v237_v3, %s857_s18  ;;  %296 = vst [vmem:[#allocation1] ss:$2 sm:$0xff] %v171_v0 }
  0x26   : > { %v297_v5 = vld.sshfl [vmem:[#allocation1] sm:$0xff pattern:$0x75316420]  ;;  %v298_v6 = vld.sshfl [vmem:[#allocation1 + $0x8] sm:$0xff pattern:$0x75316420] }
  0x27   : > { %299 = vrot.lane.b32.xlu1 %v297_v5, %s858_s19  ;;  %241 = vrot.lane.b32.xlu0 %v238_v4, %s857_s18  ;;  %356 = vst [vmem:[#allocation1] ss:$2 sm:$0xff] %v171_v0 }
  0x2e   : > { %v357_v7 = vld.sshfl [vmem:[#allocation1] sm:$0xff pattern:$0x75316420]  ;;  %v358_v8 = vld.sshfl [vmem:[#allocation1 + $0x8] sm:$0xff pattern:$0x75316420] }
  0x2f   : > { %301 = vrot.lane.b32.xlu1 %v298_v6, %s858_s19  ;;  %416 = vst [vmem:[#allocation1] ss:$2 sm:$0xff] %v171_v0  ;;  %359 = vrot.lane.b32.xlu2 %v357_v7, %s859_s20 }
  0x36   : > { %v417_v9 = vld.sshfl [vmem:[#allocation1] sm:$0xff pattern:$0x75316420]  ;;  %v418_v10 = vld.sshfl [vmem:[#allocation1 + $0x8] sm:$0xff pattern:$0x75316420] }
  0x37   : > { %419 = vrot.lane.b32.xlu0 %v417_v9, %s860_s21  ;;  %421 = vrot.lane.b32.xlu1 %v418_v10, %s860_s21  ;;  %476 = vst [vmem:[#allocation1] ss:$2 sm:$0xff] %v171_v0  ;;  %s829_s21 = sshll.u32 %s980_s13, 4 }
  0x38   : > { %361 = vrot.lane.b32.xlu2 %v358_v8, %s859_s20 }
  0x3e   : > { %v478_v11 = vld.sshfl [vmem:[#allocation1 + $0x8] sm:$0xff pattern:$0x75316420]  ;;  %v477_v12 = vld.sshfl [vmem:[#allocation1] sm:$0xff pattern:$0x75316420] }
  0x3f   : > { %481 = vrot.lane.b32.xlu0 %v478_v11, %s861_s22  ;;  %536 = vst [vmem:[#allocation1] ss:$2 sm:$0xff] %v171_v0 }
  0x40   : > { %479 = vrot.lane.b32.xlu2 %v477_v12, %s861_s22 }
  0x46   : > { %v537_v13 = vld.sshfl [vmem:[#allocation1] sm:$0xff pattern:$0x75316420]  ;;  %v538_v14 = vld.sshfl [vmem:[#allocation1 + $0x8] sm:$0xff pattern:$0x75316420] }
  0x47   : > { %539 = vrot.lane.b32.xlu1 %v537_v13, %s862_s23  ;;  %596 = vst [vmem:[#allocation1] ss:$2 sm:$0xff] %v171_v0 }
  0x48   : > { %541 = vrot.lane.b32.xlu2 %v538_v14, %s862_s23 }
  0x4e   : > { %v598_v15 = vld.sshfl [vmem:[#allocation1 + $0x8] sm:$0xff pattern:$0x75316420]  ;;  %v597_v16 = vld.sshfl [vmem:[#allocation1] sm:$0xff pattern:$0x75316420] }
  0x4f   : > { %601 = vrot.lane.b32.xlu1 %v598_v15, %s863_s24  ;;  %599 = vrot.lane.b32.xlu0 %v597_v16, %s863_s24  ;;  %656 = vst [vmem:[#allocation1] ss:$2 sm:$0xff] %v171_v0  ;;  %s170_s24 = scalar_lea.vmem %s978_s3, %s829_s21 }
  0x56   : > { %v658_v17 = vld.sshfl [vmem:[#allocation1 + $0x8] sm:$0xff pattern:$0x75316420]  ;;  %v657_v18 = vld.sshfl [vmem:[#allocation1] sm:$0xff pattern:$0x75316420] }
  0x57   : > { %661 = vrot.lane.b32.xlu0 %v658_v17, %s864_s25  ;;  %659 = vrot.lane.b32.xlu2 %v657_v18, %s864_s25 }
  0x58   : > { %175 = vperm.xlu1 %847, %v172_v24  }
  0x89   : > { %v360_v20 = vpop.permute.xlu2 %359 }
  0x91   : > { %v240_v21 = vpop.permute.xlu0 %239 }
  0x92   : > { %v362_v22 = vpop.permute.xlu2 %361 }
  0x93   : > { %v364_v29 = vsel %vm363_vm3, %v360_v20, %v362_v22 }
  0x95   : > { %v229_v54 = vpop.f32.mrf.mxu1  ;;  %v209_v55 = vpop.f32.mrf.mxu0 }
  0x99   : > { %v300_v26 = vpop.permute.xlu1 %299  ;;  %v242_v27 = vpop.permute.xlu0 %241 }
  0x9a   : > { %v244_v28 = vsel %vm243_vm2, %v240_v21, %v242_v27  ;;  %789 = vmatpush.msk.msra.mxu3 %vm187_vm0, %v242_v27  ;;  %v480_v30 = vpop.permute.xlu2 %479 }
  0x9b   : > { %787 = vmatpush.msk.msra.mxu2 %vm187_vm0, %v244_v28  ;;  %790 = vmatmul.msk.f32.vlgmr.msra.gmra.mxu3 %vm183_vm1, %v786_v25 }
  0x9c   : > { %788 = vmatmul.msk.f32.vlgmr.msra.gmra.mxu2 %vm183_vm1, %v786_v25  ;;  %799 = vmatpush.msk.msrb.mxu3 %vm187_vm0, %v362_v22 }
  0x9d   : > { %797 = vmatpush.msk.msrb.mxu2 %vm187_vm0, %v364_v29 }
  0xa1   : > { %v302_v32 = vpop.permute.xlu1 %301 }
  0xa2   : > { %v304_v34 = vsel %vm303_vm4, %v300_v26, %v302_v32  ;;  %794 = vmatpush.msk.msrb.mxu1 %vm187_vm0, %v302_v32  ;;  %v542_v36 = vpop.permute.xlu2 %541 }
  0xa3   : > { %792 = vmatpush.msk.msrb.mxu0 %vm187_vm0, %v304_v34  ;;  %795 = vmatmul.msk.f32.vlgmr.msrb.gmra.mxu1 %vm183_vm1, %v791_v31 }
  0xa4   : > { %793 = vmatmul.msk.f32.vlgmr.msrb.gmra.mxu0 %vm183_vm1, %v791_v31  ;;  %798 = vmatmul.msk.f32.vlgmr.msrb.gmra.mxu2 %vm183_vm1, %v796_v33 }
  0xa5   : > { %800 = vmatmul.msk.f32.vlgmr.msrb.gmra.mxu3 %vm183_vm1, %v796_v33 }
  0xa9   : > { %v420_v37 = vpop.permute.xlu0 %419  ;;  %v422_v38 = vpop.permute.xlu1 %421 }
  0xaa   : > { %v424_v39 = vsel %vm423_vm5, %v420_v37, %v422_v38  ;;  %804 = vmatpush.msk.msra.mxu1 %vm187_vm0, %v422_v38 }
  0xab   : > { %802 = vmatpush.msk.msra.mxu0 %vm187_vm0, %v424_v39  ;;  %805 = vmatmul.msk.f32.vlgmr.msra.gmra.mxu1 %vm183_vm1, %v801_v35 }
  0xac   : > { %803 = vmatmul.msk.f32.vlgmr.msra.gmra.mxu0 %vm183_vm1, %v801_v35  ;;  %814 = vmatpush.msk.msrb.mxu1 %vm187_vm0, %v542_v36 }
  0xb1   : > { %v482_v41 = vpop.permute.xlu0 %481  ;;  %v660_v50 = vpop.permute.xlu2 %659 }
  0xb2   : > { %v484_v43 = vsel %vm483_vm6, %v480_v30, %v482_v41  ;;  %809 = vmatpush.msk.msra.mxu3 %vm187_vm0, %v482_v41 }
  0xb3   : > { %807 = vmatpush.msk.msra.mxu2 %vm187_vm0, %v484_v43  ;;  %810 = vmatmul.msk.f32.vlgmr.msra.gmra.mxu3 %vm183_vm1, %v806_v40 }
  0xb4   : > { %808 = vmatmul.msk.f32.vlgmr.msra.gmra.mxu2 %vm183_vm1, %v806_v40  ;;  %815 = vmatmul.msk.f32.vlgmr.msrb.gmra.mxu1 %vm183_vm1, %v811_v42 }
  0xb9   : > { %v540_v44 = vpop.permute.xlu1 %539 }
  0xba   : > { %v544_v45 = vsel %vm543_vm7, %v540_v44, %v542_v36 }
  0xbb   : > { %812 = vmatpush.msk.msrb.mxu0 %vm187_vm0, %v544_v45 }
  0xbc   : > { %813 = vmatmul.msk.f32.vlgmr.msrb.gmra.mxu0 %vm183_vm1, %v811_v42 }
  0xc1   : > { %v602_v47 = vpop.permute.xlu1 %601  ;;  %v600_v48 = vpop.permute.xlu0 %599 }
  0xc2   : > { %v604_v49 = vsel %vm603_vm8, %v600_v48, %v602_v47  ;;  %819 = vmatpush.msk.msrb.mxu3 %vm187_vm0, %v602_v47 }
  0xc3   : > { %817 = vmatpush.msk.msrb.mxu2 %vm187_vm0, %v604_v49  ;;  %820 = vmatmul.msk.f32.vlgmr.msrb.gmra.mxu3 %vm183_vm1, %v816_v46 }
  0xc4   : > { %818 = vmatmul.msk.f32.vlgmr.msrb.gmra.mxu2 %vm183_vm1, %v816_v46 }
  0xc9   : > { %v662_v52 = vpop.permute.xlu0 %661 }
  0xca   : > { %v664_v53 = vsel %vm663_vm9, %v660_v50, %v662_v52  ;;  %824 = vmatpush.msk.msra.mxu1 %vm187_vm0, %v662_v52  ;;  %v176_v59 = vpop.permute.xlu1 %175 }
  0xcb   : > { %822 = vmatpush.msk.msra.mxu0 %vm187_vm0, %v664_v53  ;;  %825 = vmatmul.msk.f32.vlgmr.msra.gmra.mxu1 %vm183_vm1, %v821_v51  ;;  %v233_v61 = vadd.f32 %v229_v54, %v176_v59  ;;  %v232_v62 = vadd.f32 %v209_v55, %v176_v59 }
  0xcc   : > { %823 = vmatmul.msk.f32.vlgmr.msra.gmra.mxu0 %vm183_vm1, %v821_v51 }
 0x11e   : > { %v289_v56 = vpop.f32.mrf.mxu3 }
 0x11f   : > { %v269_v57 = vpop.f32.mrf.mxu2  ;;  %v293_v63 = vadd.f32 %v289_v56, %v233_v61 }
 0x120   : > { %v349_v58 = vpop.f32.mrf.mxu1  ;;  %v292_v0 = vadd.f32 %v269_v57, %v232_v62 }
 0x121   : > { %v329_v60 = vpop.f32.mrf.mxu0  ;;  %v353_v4 = vadd.f32 %v349_v58, %v293_v63 }
 0x122   : > { %v352_v6 = vadd.f32 %v329_v60, %v292_v0 }
 0x127   : > { %v389_v2 = vpop.f32.mrf.mxu2 }
 0x128   : > { %v409_v1 = vpop.f32.mrf.mxu3  ;;  %v469_v3 = vpop.f32.mrf.mxu1  ;;  %v412_v8 = vadd.f32 %v389_v2, %v352_v6 }
 0x129   : > { %v449_v5 = vpop.f32.mrf.mxu0  ;;  %v413_v7 = vadd.f32 %v409_v1, %v353_v4 }
 0x12a   : > { %v472_v12 = vadd.f32 %v449_v5, %v412_v8 }
 0x12b   : > { %v473_v10 = vadd.f32 %v469_v3, %v413_v7 }
 0x131   : > { %v589_v13 = vpop.f32.mrf.mxu1 }
 0x136   : > { %v529_v9 = vpop.f32.mrf.mxu3 }
 0x137   : > { %v509_v11 = vpop.f32.mrf.mxu2  ;;  %v533_v14 = vadd.f32 %v529_v9, %v473_v10 }
 0x138   : > { %v532_v16 = vadd.f32 %v509_v11, %v472_v12 }
 0x139   : > { %v569_v15 = vpop.f32.mrf.mxu0  ;;  %v593_v17 = vadd.f32 %v589_v13, %v533_v14 }
 0x13a   : > { %v592_v18 = vadd.f32 %v569_v15, %v532_v16 }
 0x146   : > { %v649_v19 = vpop.f32.mrf.mxu3 }
 0x147   : > { %v653_v20 = vadd.f32 %v649_v19, %v593_v17  ;;  %v629_v21 = vpop.f32.mrf.mxu2 }
 0x148   : > { %v652_v22 = vadd.f32 %v629_v21, %v592_v18  ;;  %v709_v23 = vpop.f32.mrf.mxu1 }
 0x149   : > { %v713_v24 = vadd.f32 %v709_v23, %v653_v20  ;;  %v689_v25 = vpop.f32.mrf.mxu0 }
 0x14a   : > { %v712_v26 = vadd.f32 %v689_v25, %v652_v22 }
 0x14b   : > { %v715_v27 = vmax.f32 %v713_v24, 0.0 }
 0x14c   : > { %v714_v28 = vmax.f32 %v712_v26, 0.0 }
 0x14d   : > { %717 = vst.msk [vmem:[%s170_s24 + $0x8] sm:$0xff] %vm663_vm9, %v715_v27 }
 0x14e   : > { %716 = vst [vmem:[%s170_s24] sm:$0xff] %v714_v28 }
 0x14f PF: > { %s13_s12 = sadd.s32 1, %s855_s12  }
 0x150   : > { %p10_p4 = scmp.ge.s32.totalorder %s13_s12, 4  }
 0x152   :  { %12 = sbr.rel (!%p10_p4) target bundleno = 1 (0x1), region = 70 }

</bundles_post_ra>
